<compile_context>
chip_gen: v7x
topology: tpu7x:2x2x1
jax: 0.10.0
libtpu: 0.0.40
codegen_flags: <defaults>
</compile_context>

<pallas_src>
import functools

import jax
import jax.numpy as jnp
from jax import lax
from jax.experimental import pallas as pl
from jax.experimental.pallas import tpu as pltpu

_NEG_INF = jnp.float32(-1e30)


def _stage2_loss_kernel(inv_temp, n_valid, data_ref, text_ref, out_ref):
    a = data_ref[...].astype(jnp.float32)   # (Np, Dp)
    b = text_ref[...].astype(jnp.float32)   # (Np, Dp)
    n_pad = a.shape[0]

    # 1/max(||x||, eps) == rsqrt(max(||x||^2, eps^2))  -> EUP rsqrt, no divide.
    eps_sq = jnp.float32(1e-16)
    inv_na = lax.rsqrt(jnp.maximum(jnp.sum(a * a, axis=1, keepdims=True), eps_sq))
    inv_nb = lax.rsqrt(jnp.maximum(jnp.sum(b * b, axis=1, keepdims=True), eps_sq))

    # Fold 1/temperature into a's normalization scale so the matmul emits logits
    # directly (moves the N*N scale down to N*D and folds into an existing mul).
    a_s = a * (inv_na * jnp.float32(inv_temp))   # (Np, Dp)
    b_n = b * inv_nb                             # (Np, Dp)

    # diag(logits) in f32: a lane reduction over D — no N x N work needed.
    diag_logits = jnp.sum(a_s * b_n, axis=1, keepdims=True)   # (Np, 1)

    # MXU in bf16 with f32 accumulation. Two products so that BOTH log-sum-exps
    # are lane (axis=1) reductions (avoids serialized axis=0 XLU reductions).
    a_bf = a_s.astype(jnp.bfloat16)
    b_bf = b_n.astype(jnp.bfloat16)
    dims = (((1,), (1,)), ((), ()))
    logits = lax.dot_general(a_bf, b_bf, dims,
                             preferred_element_type=jnp.float32)    # (Np, Np)
    logits_t = lax.dot_general(b_bf, a_bf, dims,
                               preferred_element_type=jnp.float32)  # (Np, Np)

    if n_pad != n_valid:
        # Padded rows/cols hold zero embeddings -> logits 0; mask padded columns
        # out of both LSEs (padded rows are dropped by the row mask below).
        col = lax.broadcasted_iota(jnp.int32, (n_pad, n_pad), 1)
        col_ok = col < n_valid
        logits = jnp.where(col_ok, logits, _NEG_INF)
        logits_t = jnp.where(col_ok, logits_t, _NEG_INF)

    def row_lse(x):   # numerically-stable log-sum-exp over the lane axis
        m = jnp.max(x, axis=1, keepdims=True)
        return m + jnp.log(jnp.sum(jnp.exp(x - m), axis=1, keepdims=True))

    lse_i = row_lse(logits)      # (Np, 1) per-row LSE of logits
    lse_j = row_lse(logits_t)    # (Np, 1) per-column LSE of logits

    per_row = lse_i + lse_j - 2.0 * diag_logits   # (Np, 1)
    if n_pad != n_valid:
        row = lax.broadcasted_iota(jnp.int32, (n_pad, 1), 0)
        per_row = jnp.where(row < n_valid, per_row, 0.0)

    loss = jnp.sum(per_row) * (1.0 / jnp.float32(n_valid))
    out_ref[0, 0] = loss   # scalar result -> SMEM (avoids masked partial vst)


def stage2_loss(data_embed, text_embed, temperature=0.05):
    """Pallas implementation of Stage2Loss(contrastive_loss='NormSoftmax')."""
    assert data_embed.shape == text_embed.shape and data_embed.ndim == 2
    n, d = data_embed.shape

    # Lane-dense padding: D -> multiple of 128, N -> multiple of 8. Zero feature
    # columns change neither the norms nor the dot products; padded rows are
    # masked out inside the kernel.
    d_pad = max(128, -(-d // 128) * 128)
    n_pad = max(8, -(-n // 8) * 8)
    if (n_pad, d_pad) != (n, d):
        pad = ((0, n_pad - n), (0, d_pad - d))
        data_embed = jnp.pad(data_embed, pad)
        text_embed = jnp.pad(text_embed, pad)

    kernel = functools.partial(
        _stage2_loss_kernel, float(1.0 / temperature), int(n))

    # Raise the scoped-VMEM limit only when the working set actually needs it;
    # for small problems keep the default (guaranteed-safe) configuration.
    vmem_est = 4 * (2 * n_pad * d_pad + 3 * n_pad * n_pad)
    compiler_params = None
    if vmem_est > (16 << 20):
        compiler_params = pltpu.CompilerParams(
            vmem_limit_bytes=min(2 * vmem_est, 60 << 20))
    # TODO(synk): for very large N (>~2-3k on v7x's 64 MiB VMEM) switch to a
    # row/col-tiled grid that accumulates the row/col LSEs in VMEM scratch.

    out = pl.pallas_call(
        kernel,
        out_shape=jax.ShapeDtypeStruct((1, 1), jnp.float32),
        in_specs=[
            pl.BlockSpec(memory_space=pltpu.MemorySpace.VMEM),
            pl.BlockSpec(memory_space=pltpu.MemorySpace.VMEM),
        ],
        out_specs=pl.BlockSpec(memory_space=pltpu.MemorySpace.SMEM),
        compiler_params=compiler_params,
    )(data_embed, text_embed)
    return out[0, 0]


def _reference_loss(data_embed, text_embed, temperature=0.05):
    # pure-JAX, f32 reference of the PyTorch forward.
    eps = 1e-8
    a = data_embed.astype(jnp.float32)
    b = text_embed.astype(jnp.float32)
    a = a / jnp.maximum(jnp.linalg.norm(a, axis=1, keepdims=True), eps)
    b = b / jnp.maximum(jnp.linalg.norm(b, axis=1, keepdims=True), eps)
    logits = (a @ b.T) / temperature
    i_lsm = jax.nn.log_softmax(logits, axis=1)
    j_lsm = jax.nn.log_softmax(logits.T, axis=1)
    n = logits.shape[0]
    return -(jnp.trace(i_lsm) / n) - (jnp.trace(j_lsm) / n)


if __name__ == "__main__":
    # Stage2Loss has no learnable parameters used in forward; temperature=0.05.
    N, D = 8, 32
    key = jax.random.PRNGKey(0)
    k1, k2 = jax.random.split(key)
    data_embed = jax.random.normal(k1, (N, D), dtype=jnp.float32)
    text_embed = jax.random.normal(k2, (N, D), dtype=jnp.float32)

    loss = stage2_loss(data_embed, text_embed, temperature=0.05)
    loss = jax.block_until_ready(loss)

    ref = _reference_loss(data_embed, text_embed, temperature=0.05)
    # bf16 MXU inputs (f32 accumulate, f32 diagonal) -> slightly looser tolerance
    # than a pure-f32 comparison.
    assert jnp.allclose(loss, ref, atol=5e-2, rtol=1e-2), (loss, ref)

    print("KERNEL_OK")
</pallas_src>

<mosaic_0001>
module attributes {stable_mosaic.version = 11 : i64} {
  func.func @_stage2_loss_kernel(%arg0: memref<8x128xf32, #tpu.memory_space<vmem>>, %arg1: memref<8x128xf32, #tpu.memory_space<vmem>>, %arg2: memref<1x1xf32, #tpu.memory_space<smem>>) attributes {dimension_semantics = [], scalar_prefetch = 0 : i64, scratch_operands = 0 : i64, tpu.core_type = #tpu.core_type<tc>} {
    %c0 = arith.constant 0 : index
    %c0_0 = arith.constant 0 : index
    %0 = vector.load %arg0[%c0, %c0_0] : memref<8x128xf32, #tpu.memory_space<vmem>>, vector<8x128xf32>
    %c0_1 = arith.constant 0 : index
    %c0_2 = arith.constant 0 : index
    %1 = vector.load %arg1[%c0_1, %c0_2] : memref<8x128xf32, #tpu.memory_space<vmem>>, vector<8x128xf32>
    %2 = arith.mulf %0, %0 : vector<8x128xf32>
    %cst = arith.constant dense<0.000000e+00> : vector<8xf32>
    %3 = vector.multi_reduction <add>, %2, %cst [1] : vector<8x128xf32> to vector<8xf32>
    %4 = vector.shape_cast %3 : vector<8xf32> to vector<8x1xf32>
    %cst_3 = arith.constant 1.000000e-16 : f32
    %5 = vector.broadcast %cst_3 : f32 to vector<8x1xf32>
    %6 = arith.maximumf %4, %5 : vector<8x1xf32>
    %7 = math.rsqrt %6 : vector<8x1xf32>
    %8 = arith.mulf %1, %1 : vector<8x128xf32>
    %cst_4 = arith.constant dense<0.000000e+00> : vector<8xf32>
    %9 = vector.multi_reduction <add>, %8, %cst_4 [1] : vector<8x128xf32> to vector<8xf32>
    %10 = vector.shape_cast %9 : vector<8xf32> to vector<8x1xf32>
    %cst_5 = arith.constant 1.000000e-16 : f32
    %11 = vector.broadcast %cst_5 : f32 to vector<8x1xf32>
    %12 = arith.maximumf %10, %11 : vector<8x1xf32>
    %13 = math.rsqrt %12 : vector<8x1xf32>
    %cst_6 = arith.constant 2.000000e+01 : f32
    %14 = vector.broadcast %cst_6 : f32 to vector<8x1xf32>
    %15 = arith.mulf %7, %14 : vector<8x1xf32>
    %16 = vector.broadcast %15 : vector<8x1xf32> to vector<8x128xf32>
    %17 = arith.mulf %0, %16 : vector<8x128xf32>
    %18 = vector.broadcast %13 : vector<8x1xf32> to vector<8x128xf32>
    %19 = arith.mulf %1, %18 : vector<8x128xf32>
    %20 = arith.mulf %17, %19 : vector<8x128xf32>
    %cst_7 = arith.constant dense<0.000000e+00> : vector<8xf32>
    %21 = vector.multi_reduction <add>, %20, %cst_7 [1] : vector<8x128xf32> to vector<8xf32>
    %22 = vector.shape_cast %21 : vector<8xf32> to vector<8x1xf32>
    %23 = arith.truncf %17 : vector<8x128xf32> to vector<8x128xbf16>
    %24 = arith.truncf %19 : vector<8x128xf32> to vector<8x128xbf16>
    %cst_8 = arith.constant dense<0.000000e+00> : vector<8x8xf32>
    %25 = tpu.matmul %23, %24, %cst_8 {dimension_numbers = #tpu.dot_dimension_numbers<[1], [1], [0], [0], [0, 0, 1, 0], [], []>} : vector<8x128xbf16>, vector<8x128xbf16>, vector<8x8xf32> -> vector<8x8xf32>
    %cst_9 = arith.constant dense<0.000000e+00> : vector<8x8xf32>
    %26 = tpu.matmul %24, %23, %cst_9 {dimension_numbers = #tpu.dot_dimension_numbers<[1], [1], [0], [0], [0, 0, 1, 0], [], []>} : vector<8x128xbf16>, vector<8x128xbf16>, vector<8x8xf32> -> vector<8x8xf32>
    %cst_10 = arith.constant dense<0xFF800000> : vector<8xf32>
    %27 = vector.multi_reduction <maximumf>, %25, %cst_10 [1] : vector<8x8xf32> to vector<8xf32>
    %28 = vector.shape_cast %27 : vector<8xf32> to vector<8x1xf32>
    %29 = vector.broadcast %28 : vector<8x1xf32> to vector<8x8xf32>
    %30 = arith.subf %25, %29 : vector<8x8xf32>
    %31 = math.exp %30 : vector<8x8xf32>
    %cst_11 = arith.constant dense<0.000000e+00> : vector<8xf32>
    %32 = vector.multi_reduction <add>, %31, %cst_11 [1] : vector<8x8xf32> to vector<8xf32>
    %33 = vector.shape_cast %32 : vector<8xf32> to vector<8x1xf32>
    %34 = math.log %33 : vector<8x1xf32>
    %35 = arith.addf %28, %34 : vector<8x1xf32>
    %cst_12 = arith.constant dense<0xFF800000> : vector<8xf32>
    %36 = vector.multi_reduction <maximumf>, %26, %cst_12 [1] : vector<8x8xf32> to vector<8xf32>
    %37 = vector.shape_cast %36 : vector<8xf32> to vector<8x1xf32>
    %38 = vector.broadcast %37 : vector<8x1xf32> to vector<8x8xf32>
    %39 = arith.subf %26, %38 : vector<8x8xf32>
    %40 = math.exp %39 : vector<8x8xf32>
    %cst_13 = arith.constant dense<0.000000e+00> : vector<8xf32>
    %41 = vector.multi_reduction <add>, %40, %cst_13 [1] : vector<8x8xf32> to vector<8xf32>
    %42 = vector.shape_cast %41 : vector<8xf32> to vector<8x1xf32>
    %43 = math.log %42 : vector<8x1xf32>
    %44 = arith.addf %37, %43 : vector<8x1xf32>
    %45 = arith.addf %35, %44 : vector<8x1xf32>
    %cst_14 = arith.constant 2.000000e+00 : f32
    %46 = vector.broadcast %cst_14 : f32 to vector<8x1xf32>
    %47 = arith.mulf %46, %22 : vector<8x1xf32>
    %48 = arith.subf %45, %47 : vector<8x1xf32>
    %49 = vector.shape_cast %48 : vector<8x1xf32> to vector<1x8x1xf32>
    %cst_15 = arith.constant dense<0.000000e+00> : vector<1xf32>
    %50 = vector.multi_reduction <add>, %49, %cst_15 [1, 2] : vector<1x8x1xf32> to vector<1xf32>
    %51 = vector.shape_cast %50 : vector<1xf32> to vector<1x1x1xf32>
    %52 = vector.extract %51[0, 0, 0] : f32 from vector<1x1x1xf32>
    %cst_16 = arith.constant 1.000000e+00 : f32
    %cst_17 = arith.constant 8.000000e+00 : f32
    %53 = arith.divf %cst_16, %cst_17 : f32
    %54 = arith.mulf %52, %53 : f32
    %c0_18 = arith.constant 0 : index
    %c0_19 = arith.constant 0 : index
    %55 = memref.load %arg2[%c0_18, %c0_19] : memref<1x1xf32, #tpu.memory_space<smem>>
    memref.store %54, %arg2[%c0_18, %c0_19] : memref<1x1xf32, #tpu.memory_space<smem>>
    return
  }
}

</mosaic_0001>

<bundles_post_ra>
// kernel: tpu_custom_call.1
= control target key start
LH: loop header
LB: loop body
LE: loop exit
PB: predicated region body
PF: predicated region fallthrough
CT: control target
= control target key end

     0   :  { %7 = vsyncpa [#allocation3], 0  ;;  %s349_s0 = inlined_call_operand.hbm [shape: f32[8,128], index: 0, kind: input, shape index: {}]   ;;  %s350_s1 = inlined_call_operand.hbm [shape: f32[8,128], index: 1, kind: input, shape index: {}]   ;;  %s351_s2 = inlined_call_operand.hbm [shape: f32[1,1], index: 2, kind: output, shape index: {}]  }
   0x1   :  { %8 = vsyncpa [#allocation6], 0 }
   0x2   :  { %9 = vsyncpa [#allocation4], 0  ;;  %s289_s9 = smov [#allocation2]   ;;  %s290_s11 = smov [#allocation5]  }
   0x3   :  { %s16_s10 = sshll.u32 %s289_s9, 4  ;;  %s26_s12 = sshll.u32 %s290_s11, 4  ;;  %s17_s10 = int_to_ptr.vmem [resolvable:$true] %s16_s10  ;;  %s27_s12 = int_to_ptr.vmem [resolvable:$true] %s26_s12 }
   0x4   :  { %s229_s15 = scalar_lea.hbm %s349_s0, 128 }
   0x5   :  { %p230_p0 = scmp.ne.s32.totalorder %s349_s0, %s229_s15  ;;  %p233_p1 = scmp.lt.u32.totalorder %s229_s15, %s349_s0 }
   0x7   :  { %p235_p2 = pnand %p233_p1, %p230_p0 }
   0x9   :  { %238 = shalt.err (!%p235_p2)
}
   0xa   :  { %s239_s20 = scalar_lea.vmem %s17_s10, 128  ;;  %p244_p4 = scmp.lt.s32.totalorder %s17_s10, %s17_s10 }
   0xb   :  { %p240_p3 = scmp.ne.s32.totalorder %s17_s10, %s239_s20  ;;  %p245_p5 = scmp.lt.s32.totalorder %s239_s20, %s239_s20 }
   0xd   :  { %p246_p6 = por %p245_p5, %p244_p4 }
   0xf   :  { %p247_p7 = pnand %p246_p6, %p240_p3 }
  0x11   :  { %250 = shalt.err (!%p247_p7)
}
  0x12   :  { %19 = dma.hbm_to_vmem [thread:$0]  %s349_s0, 128, %s17_s10, [#allocation3]  }
  0x13   :  { %s251_s25 = scalar_lea.hbm %s350_s1, 128 }
  0x14   :  { %p252_p8 = scmp.ne.s32.totalorder %s350_s1, %s251_s25  ;;  %p255_p9 = scmp.lt.u32.totalorder %s251_s25, %s350_s1 }
  0x16   :  { %p257_p10 = pnand %p255_p9, %p252_p8 }
  0x18   :  { %260 = shalt.err (!%p257_p10)
}
  0x19   :  { %s261_s30 = scalar_lea.vmem %s27_s12, 128  ;;  %p266_p12 = scmp.lt.s32.totalorder %s27_s12, %s27_s12 }
  0x1a   :  { %p262_p11 = scmp.ne.s32.totalorder %s27_s12, %s261_s30  ;;  %p267_p13 = scmp.lt.s32.totalorder %s261_s30, %s261_s30 }
  0x1c   :  { %p268_p0 = por %p267_p13, %p266_p12 }
  0x1e   :  { %p269_p1 = pnand %p268_p0, %p262_p11 }
  0x20   :  { %272 = shalt.err (!%p269_p1)
}
  0x21   :  { %29 = dma.hbm_to_vmem [thread:$0]  %s350_s1, 128, %s27_s12, [#allocation6]  }
  0x22   :  { %283 = dma.done.wait [#allocation3], 128  }
  0x23   :  { %284 = vsyncadd [#allocation3], 4294967168 }
  0x24   :  { %285 = dma.done.wait [#allocation6], 128  }
  0x25   :  { %286 = vsyncadd [#allocation6], 4294967168  ;;  %v37_v0 = vld [vmem:[#allocation2] sm:$0xff]  ;;  %v38_v1 = vld [vmem:[#allocation5] sm:$0xff]  ;;  %v291_v4 = vmov 0.0   ;;  %vm292_vm0 = vmmov 0  }
  0x26   :  { %v39_v2 = vmul.f32 %v37_v0, %v37_v0  ;;  %v44_v3 = vmul.f32 %v38_v1, %v38_v1  ;;  %204 = vmatprep.subr.bf16.mxu1 %v291_v4  ;;  %198 = vmatprep.subr.bf16.mxu0 %v291_v4  ;;  %vm137_vm1 = vcmask 64512   ;;  %vm165_vm2 = vcmask 7168   ;;  %s273_s7 = scalar_lea.hbm %s351_s2, 16 }
  0x27   :  { %206 = vmatprep.mubr.msk.bf16.mxu1 %vm292_vm0, %v291_v4  ;;  %200 = vmatprep.mubr.msk.bf16.mxu0 %vm292_vm0, %v291_v4  ;;  %p274_p2 = scmp.ne.s32.totalorder %s351_s2, %s273_s7  ;;  %p277_p3 = scmp.lt.u32.totalorder %s273_s7, %s351_s2 }
  0x28   :  { %40 = vadd.xlane.f32.xlu0 %v39_v2 }
  0x29   :  { %p279_p4 = pnand %p277_p3, %p274_p2 }
  0x2c   :  { %45 = vadd.xlane.f32.xlu0 %v44_v3 }
  0xb5   :  { %v41_v5 = vpop.xlane.xlu0 %40 }
  0xb6   :  { %v42_v6 = vmax.f32 %v41_v5, 1e-16 }
  0xb8   :  { %217 = vrsqrt.f32 %v42_v6 }
  0xb9   :  { %v46_v7 = vpop.xlane.xlu0 %45 }
  0xba   :  { %v47_v8 = vmax.f32 %v46_v7, 1e-16 }
  0xbc   :  { %219 = vrsqrt.f32 %v47_v8 }
  0xc2   :  { %v218_v9 = vpop.eup %217 }
  0xc3   :  { %v49_v10 = vmul.f32 20.0, %v218_v9 }
  0xc5   :  { %v50_v11 = vmul.f32 %v49_v10, %v37_v0 }
  0xc6   :  { %v220_v12 = vpop.eup %219 }
  0xc7   :  { %v55_v13 = vpack.c.bf16 %v50_v11, %v50_v11  ;;  %v51_v14 = vmul.f32 %v220_v12, %v38_v1 }
  0xc9   :  { %205 = vmatpush3.bf16.xpose.msra.mxu1 %v55_v13  ;;  %v56_v15 = vpack.c.bf16 %v51_v14, %v51_v14  ;;  %v52_v16 = vmul.f32 %v51_v14, %v50_v11 }
  0xcb   :  { %199 = vmatpush3.bf16.xpose.msra.mxu0 %v56_v15 }
  0xd0   :  { %207 = vmatmul.mubr.bf16.vlgmr.msra.gmra.mrb[0].mxu1 %v56_v15 }
  0xd2   :  { %201 = vmatmul.mubr.bf16.vlgmr.msra.gmra.mrb[0].mxu0 %v55_v13 }
 0x1a3   :  { %v131_v17 = vpop.f32.mrb[0].mxu1 }
 0x1a4   :  { %v208_v18 = vpop.f32.mrb[1].mxu1  ;;  %v150_v26 = vsel %vm137_vm1, %v131_v17, -inf }
 0x1a5   :  { %v91_v19 = vpop.f32.mrb[0].mxu0  ;;  %v134_v20 = vpop.f32.mrb[2].mxu1 }
 0x1a6   :  { %v202_v21 = vpop.f32.mrb[1].mxu0  ;;  %v209_v22 = vpop.f32.mrb[3].mxu1  ;;  %v138_v23 = vsel %vm137_vm1, %v91_v19, -inf }
 0x1a7   :  { %139 = vmax.xlane.f32.xlu1 %v138_v23  ;;  %v94_v24 = vpop.f32.mrb[2].mxu0 }
 0x1a8   :  { %v203_v25 = vpop.f32.mrb[3].mxu0 }
 0x1ab   :  { %151 = vmax.xlane.f32.xlu1 %v150_v26 }
 0x234   :  { %v140_v27 = vpop.xlane.xlu1 %139 }
 0x235   :  { %v141_v28 = vsub.f32 %v91_v19, %v140_v27 }
 0x237   :  { %v142_v29 = vmul.f32 1.442695, %v141_v28 }
 0x238   :  { %v152_v30 = vpop.xlane.xlu1 %151 }
 0x239   :  { %221 = vpow2.f32 %v142_v29  ;;  %v153_v31 = vsub.f32 %v131_v17, %v152_v30 }
 0x23b   :  { %v154_v32 = vmul.f32 1.442695, %v153_v31 }
 0x23d   :  { %223 = vpow2.f32 %v154_v32 }
 0x243   :  { %v222_v33 = vpop.eup %221 }
 0x244   :  { %v144_v34 = vsel %vm137_vm1, %v222_v33, 0.0 }
 0x245   :  { %145 = vadd.xlane.f32.xlu0 %v144_v34 }
 0x247   :  { %v224_v35 = vpop.eup %223 }
 0x248   :  { %v156_v36 = vsel %vm137_vm1, %v224_v35, 0.0 }
 0x249   :  { %157 = vadd.xlane.f32.xlu1 %v156_v36  ;;  %53 = vadd.xlane.f32.xlu0 %v52_v16 }
 0x2d2   :  { %v146_v37 = vpop.xlane.xlu0 %145 }
 0x2d3   :  { %225 = vlog2.f32 %v146_v37 }
 0x2d6   :  { %v158_v38 = vpop.xlane.xlu1 %157  ;;  %v54_v43 = vpop.xlane.xlu0 %53 }
 0x2d7   :  { %227 = vlog2.f32 %v158_v38  ;;  %v163_v47 = vmul.f32 2.0, %v54_v43 }
 0x2dd   :  { %v226_v39 = vpop.eup %225 }
 0x2de   :  { %v148_v40 = vmul.f32 0.6931472, %v226_v39 }
 0x2e0   :  { %v149_v44 = vadd.f32 %v148_v40, %v140_v27 }
 0x2e1   :  { %v228_v41 = vpop.eup %227 }
 0x2e2   :  { %v160_v42 = vmul.f32 0.6931472, %v228_v41 }
 0x2e4   :  { %v161_v45 = vadd.f32 %v160_v42, %v152_v30 }
 0x2e6   :  { %v162_v46 = vadd.f32 %v161_v45, %v149_v44 }
 0x2e8   :  { %v164_v48 = vsub.f32 %v162_v46, %v163_v47 }
 0x2ea   :  { %v166_v49 = vsel %vm165_vm2, %v164_v48, 0.0 }
 0x2eb   :  { %167 = vadd.xlane.f32.xlu1 %v166_v49 }
 0x378   :  { %v168_v50 = vpop.xlane.xlu1 %167 }
 0x379   :  { %v169_v51 = vrot.slane %v168_v50, 4 }
 0x37b   :  { %v170_v52 = vadd.f32 %v169_v51, %v168_v50 }
 0x37d   :  { %v171_v53 = vrot.slane %v170_v52, 2 }
 0x37f   :  { %v172_v54 = vadd.f32 %v171_v53, %v170_v52 }
 0x381   :  { %v173_v55 = vrot.slane %v172_v54, 1 }
 0x383   :  { %v174_v56 = vadd.f32 %v173_v55, %v172_v54 }
 0x385   :  { %210 = vpush %v174_v56 }
 0x3b6   :  { %s211_s1 = spop %210 }
 0x3b7   :  { %s176_s4 = smul.f32 0.125, %s211_s1 }
 0x3b9   :  { %178 = sst [smem:[#allocation7]] %s176_s4 }
 0x3ba   :  { %282 = shalt.err (!%p279_p4)
}
 0x3bb   :  { %s293_s12 = smov [#allocation7]  }
 0x3bc   :  { %186 = dma.smem_to_hbm %s293_s12, 16, %s351_s2, [#allocation4]  }
 0x3bd   :  { %287 = dma.done.wait [#allocation4], 16  }
 0x3be   :  { %288 = vsyncadd [#allocation4], 4294967280 }
 0x3bf   :  { %190 = sfence }
 0x3c0   :  { %191 = vsyncpa [#allocation3], 1 }
 0x3c1   :  { %192 = vsyncpa [#allocation6], 1 }
 0x3c2   :  { %193 = vsyncpa [#allocation4], 1 }

</bundles_post_ra>
